<compile_context>
chip_gen: v6e
topology: v6e:2x2x1
jax: 0.10.0
libtpu: 0.0.40
codegen_flags: <defaults>
</compile_context>

<pallas_src>
import functools

import jax
import jax.numpy as jnp
from jax import lax
from jax.experimental import pallas as pl
from jax.experimental.pallas import tpu as pltpu


def _fused_mha_kernel(x_ref, w_qkv_ref, o_ref, *, num_heads, d_out):
    """One grid step = one block of batch elements; all heads share one fused QKV matmul.

    x_ref     : (bt, T, d_in)          activation block
    w_qkv_ref : (d_in, 3 * H * d_out)  fused [Wq | Wk | Wv] weights (resident in VMEM)
    o_ref     : (bt, T, H * d_out)     lane-dense output == torch.cat(per-head outputs, dim=-1)
    """
    bt, T, d_in = x_ref.shape
    hd = num_heads * d_out
    in_dtype = x_ref.dtype

    # Single fused projection matmul for Q, K, V of all heads (one 3*H*d_out-wide RHS instead
    # of three H*d_out-wide ones); native input dtype on the MXU, f32 accumulation.
    x2d = x_ref[...].reshape(bt * T, d_in)
    qkv = jnp.dot(x2d, w_qkv_ref[...], preferred_element_type=jnp.float32)  # (bt*T, 3*H*d_out)

    # Zero-cost static slices of the fused result.
    q = qkv[:, 0 * hd:1 * hd]
    k = qkv[:, 1 * hd:2 * hd]
    v = qkv[:, 2 * hd:3 * hd]

    # Fold the softmax scale into q (O(bt*T*H*d_out) instead of scaling (H, T, T) scores).
    # NOTE: the source CausalAttention divides by keys.shape[-1] ** 0.05 (likely a typo for
    # 0.5) -- reproduced literally for exact semantics.
    q = q * (1.0 / float(d_out) ** 0.05)

    # Causal mask, built once per grid step (T is tiny, so this is trivially cheap).
    row = lax.broadcasted_iota(jnp.int32, (T, T), 0)
    col = lax.broadcasted_iota(jnp.int32, (T, T), 1)
    causal = (col > row)[None]                                    # (1, T, T), broadcast over bt

    # Per-head attention.  The head loop is a static Python unroll (H is small); folding heads
    # into a dot_general batch dim would not widen the MXU work (the contraction dim is d_out
    # either way), so we keep the known-good 3-D batched einsum pattern.
    outs = []
    for h in range(num_heads):
        sl = slice(h * d_out, (h + 1) * d_out)
        # Cast MXU operands back to the input dtype (no-op for f32; bf16 fast path otherwise).
        qh = q[:, sl].astype(in_dtype).reshape(bt, T, d_out)
        kh = k[:, sl].astype(in_dtype).reshape(bt, T, d_out)
        vh = v[:, sl].astype(in_dtype).reshape(bt, T, d_out)

        scores = jnp.einsum("bqd,bkd->bqk", qh, kh,
                            preferred_element_type=jnp.float32)   # (bt, T, T)
        scores = jnp.where(causal, -jnp.inf, scores)              # mask written into scores

        # Numerically stable softmax in f32; EUP reciprocal instead of a VALU divide.
        m = jnp.max(scores, axis=-1, keepdims=True)
        e = jnp.exp(scores - m)
        inv_l = pl.reciprocal(jnp.sum(e, axis=-1, keepdims=True), approx=True)
        attn = e * inv_l

        # TODO(synk): nn.Dropout(0.5) on the attention weights is stochastic in training mode;
        # implemented here as eval-mode identity (deterministic inference).

        ctx = jnp.einsum("bqk,bkd->bqd", attn.astype(in_dtype), vh,
                         preferred_element_type=jnp.float32)      # (bt, T, d_out)
        outs.append(ctx)

    # Head-major concat == torch.cat(per-head outputs, dim=-1); one lane-dense slab store.
    o_ref[...] = jnp.concatenate(outs, axis=-1).astype(o_ref.dtype)


def fuse_qkv_weights(wq, wk, wv):
    """Fuse per-head (H, d_in, d_out) Q/K/V weights into one (d_in, 3*H*d_out) matrix.

    Called ONCE at parameter-init time (hoisted out of the hot call path).  Within each third,
    column [d, h*d_out + o] equals w[h, d, o], so static slices of x @ w_qkv yield the
    per-head projections already in torch.cat(dim=-1) order.
    """
    def flat(w):
        h, d_in, d_out = w.shape
        return jnp.transpose(w, (1, 0, 2)).reshape(d_in, h * d_out)

    return jnp.concatenate([flat(wq), flat(wk), flat(wv)], axis=-1)


def multi_head_causal_attention(x, w_qkv, *, num_heads, d_out, block_b=None):
    """x: (B, T, d_in); w_qkv: (d_in, 3*H*d_out) pre-fused -> (B, T, H*d_out)."""
    B, T, d_in = x.shape
    hd = num_heads * d_out
    assert w_qkv.shape == (d_in, 3 * hd), w_qkv.shape

    bt = B if block_b is None else min(block_b, B)    # whole batch in one grid step when small
    assert B % bt == 0, (B, bt)

    kernel = functools.partial(_fused_mha_kernel, num_heads=num_heads, d_out=d_out)

    return pl.pallas_call(
        kernel,
        out_shape=jax.ShapeDtypeStruct((B, T, hd), x.dtype),
        grid_spec=pltpu.PrefetchScalarGridSpec(
            num_scalar_prefetch=0,
            grid=(B // bt,),                           # a single step at the toy shape
            in_specs=[
                pl.BlockSpec((bt, T, d_in), lambda b: (b, 0, 0)),    # batch block of x
                pl.BlockSpec((d_in, 3 * hd), lambda b: (0, 0)),      # fused QKV weights, resident
            ],
            out_specs=pl.BlockSpec((bt, T, hd), lambda b: (b, 0, 0)),
        ),
        # Single grid step -> nothing to shard across cores; mark "arbitrary".  For production
        # batch sizes keep >= 2x num_cores batch blocks and consider CORE_PARALLEL / core_map.
        compiler_params=pltpu.CompilerParams(dimension_semantics=("arbitrary",)),
    )(x, w_qkv)


def _reference(x, wq, wk, wv):
    """Plain-JAX reference with identical semantics (silent correctness check)."""
    B, T, d_in = x.shape
    H, _, d_out = wq.shape
    outs = []
    for h in range(H):
        q = x @ wq[h]
        k = x @ wk[h]
        v = x @ wv[h]
        s = jnp.einsum("btd,bsd->bts", q, k)
        mask = jnp.triu(jnp.ones((T, T), bool), k=1)
        s = jnp.where(mask[None], -jnp.inf, s)
        w = jax.nn.softmax(s / (d_out ** 0.05), axis=-1)
        outs.append(jnp.einsum("bts,bsd->btd", w, v))
    return jnp.concatenate(outs, axis=-1)


if __name__ == "__main__":
    # Matches the module-level setup in the source script:
    # inputs: (6, 3), batch = stack((inputs, inputs)) -> (2, 6, 3)
    inputs = jnp.array(
        [[0.43, 0.15, 0.89],
         [0.55, 0.87, 0.66],
         [0.57, 0.85, 0.64],
         [0.22, 0.58, 0.33],
         [0.77, 0.25, 0.10],
         [0.05, 0.80, 0.55]], dtype=jnp.float32)
    x = jnp.stack((inputs, inputs), axis=0)           # (B=2, T=6, d_in=3)

    d_in = 3
    d_out = 2
    context_length = x.shape[1]                       # 6
    num_heads = 2
    dropout_p = 0.5                                   # identity at inference (see TODO)

    # Deterministic per-head weights for W_query / W_key / W_value (bias=False).
    key = jax.random.PRNGKey(0)
    kq, kk, kv = jax.random.split(key, 3)
    bound = 1.0 / (d_in ** 0.5)
    wq = jax.random.uniform(kq, (num_heads, d_in, d_out), jnp.float32, -bound, bound)
    wk = jax.random.uniform(kk, (num_heads, d_in, d_out), jnp.float32, -bound, bound)
    wv = jax.random.uniform(kv, (num_heads, d_in, d_out), jnp.float32, -bound, bound)

    # Weight fusion done ONCE here (parameter-init time), not inside the per-call path.
    w_qkv = fuse_qkv_weights(wq, wk, wv)

    out = multi_head_causal_attention(x, w_qkv, num_heads=num_heads, d_out=d_out)
    out = jax.block_until_ready(out)

    ref = _reference(x, wq, wk, wv)
    assert out.shape == (2, context_length, num_heads * d_out)
    # Tolerance budget covers the EUP approx reciprocal (~1e-4 relative) in the softmax.
    assert jnp.allclose(out, ref, atol=2e-3, rtol=2e-3), float(jnp.max(jnp.abs(out - ref)))

    print("KERNEL_OK")
</pallas_src>

<mosaic_0001>
module attributes {stable_mosaic.version = 11 : i64} {
  func.func @_fused_mha_kernel(%arg0: i32, %arg1: memref<2x6x3xf32, #tpu.memory_space<vmem>>, %arg2: memref<3x12xf32, #tpu.memory_space<vmem>>, %arg3: memref<2x6x4xf32, #tpu.memory_space<vmem>>) attributes {dimension_semantics = [#tpu.dimension_semantics<arbitrary>], iteration_bounds = array<i64: 1>, scalar_prefetch = 0 : i64, scratch_operands = 0 : i64, tpu.core_type = #tpu.core_type<tc>, window_params = [{transform_indices = @transform_0, window_bounds = array<i64: 2, 6, 3>}, {pipeline_mode = #tpu.pipeline_mode<synchronous>, transform_indices = @transform_1, window_bounds = array<i64: 3, 12>}, {transform_indices = @transform_2, window_bounds = array<i64: 2, 6, 4>}]} {
    %c0 = arith.constant 0 : index
    %c0_0 = arith.constant 0 : index
    %c0_1 = arith.constant 0 : index
    %0 = vector.load %arg1[%c0, %c0_0, %c0_1] : memref<2x6x3xf32, #tpu.memory_space<vmem>>, vector<2x6x3xf32>
    %1 = vector.shape_cast %0 : vector<2x6x3xf32> to vector<12x3xf32>
    %c0_2 = arith.constant 0 : index
    %c0_3 = arith.constant 0 : index
    %2 = vector.load %arg2[%c0_2, %c0_3] : memref<3x12xf32, #tpu.memory_space<vmem>>, vector<3x12xf32>
    %cst = arith.constant dense<0.000000e+00> : vector<12x12xf32>
    %3 = tpu.matmul %1, %2, %cst {dimension_numbers = #tpu.dot_dimension_numbers<[1], [0], [0], [1], [0, 0, 1, 1], [], []>} : vector<12x3xf32>, vector<3x12xf32>, vector<12x12xf32> -> vector<12x12xf32>
    %4 = vector.extract_strided_slice %3 {offsets = [0, 0], sizes = [12, 4], strides = [1, 1]} : vector<12x12xf32> to vector<12x4xf32>
    %5 = vector.extract_strided_slice %3 {offsets = [0, 4], sizes = [12, 4], strides = [1, 1]} : vector<12x12xf32> to vector<12x4xf32>
    %6 = vector.extract_strided_slice %3 {offsets = [0, 8], sizes = [12, 4], strides = [1, 1]} : vector<12x12xf32> to vector<12x4xf32>
    %cst_4 = arith.constant 0.965936303 : f32
    %7 = vector.broadcast %cst_4 : f32 to vector<12x4xf32>
    %8 = arith.mulf %4, %7 : vector<12x4xf32>
    %9 = tpu.iota {dimensions = array<i32: 0>} : vector<6x6xi32>
    %10 = tpu.iota {dimensions = array<i32: 1>} : vector<6x6xi32>
    %11 = arith.cmpi sgt, %10, %9 : vector<6x6xi32>
    %12 = vector.shape_cast %11 : vector<6x6xi1> to vector<1x6x6xi1>
    %13 = vector.extract_strided_slice %8 {offsets = [0, 0], sizes = [12, 2], strides = [1, 1]} : vector<12x4xf32> to vector<12x2xf32>
    %14 = vector.shape_cast %13 : vector<12x2xf32> to vector<2x6x2xf32>
    %15 = vector.extract_strided_slice %5 {offsets = [0, 0], sizes = [12, 2], strides = [1, 1]} : vector<12x4xf32> to vector<12x2xf32>
    %16 = vector.shape_cast %15 : vector<12x2xf32> to vector<2x6x2xf32>
    %17 = vector.extract_strided_slice %6 {offsets = [0, 0], sizes = [12, 2], strides = [1, 1]} : vector<12x4xf32> to vector<12x2xf32>
    %18 = vector.shape_cast %17 : vector<12x2xf32> to vector<2x6x2xf32>
    "tpu.trace_start"() <{level = 10 : i32, message = "bqd,bkd->bqk"}> : () -> ()
    %cst_5 = arith.constant dense<0.000000e+00> : vector<2x6x6xf32>
    %19 = tpu.matmul %14, %16, %cst_5 {dimension_numbers = #tpu.dot_dimension_numbers<[2], [2], [1], [1], [0, 0, 0, 1, 1, 1], [0], [0]>} : vector<2x6x2xf32>, vector<2x6x2xf32>, vector<2x6x6xf32> -> vector<2x6x6xf32>
    %cst_6 = arith.constant 0xFF800000 : f32
    "tpu.trace_stop"() : () -> ()
    %20 = vector.shape_cast %12 : vector<1x6x6xi1> to vector<1x6x6xi1>
    %21 = vector.broadcast %20 : vector<1x6x6xi1> to vector<2x6x6xi1>
    %22 = vector.broadcast %cst_6 : f32 to vector<2x6x6xf32>
    %23 = arith.select %21, %22, %19 : vector<2x6x6xi1>, vector<2x6x6xf32>
    %cst_7 = arith.constant dense<0xFF800000> : vector<2x6xf32>
    %24 = vector.multi_reduction <maximumf>, %23, %cst_7 [2] : vector<2x6x6xf32> to vector<2x6xf32>
    %25 = vector.shape_cast %24 : vector<2x6xf32> to vector<2x6x1xf32>
    %26 = vector.broadcast %25 : vector<2x6x1xf32> to vector<2x6x6xf32>
    %27 = arith.subf %23, %26 : vector<2x6x6xf32>
    %28 = math.exp %27 : vector<2x6x6xf32>
    %cst_8 = arith.constant dense<0.000000e+00> : vector<2x6xf32>
    %29 = vector.multi_reduction <add>, %28, %cst_8 [2] : vector<2x6x6xf32> to vector<2x6xf32>
    %30 = vector.shape_cast %29 : vector<2x6xf32> to vector<2x6x1xf32>
    %31 = tpu.reciprocal %30 {approx = true} : vector<2x6x1xf32> -> vector<2x6x1xf32>
    %32 = vector.broadcast %31 : vector<2x6x1xf32> to vector<2x6x6xf32>
    %33 = arith.mulf %28, %32 : vector<2x6x6xf32>
    "tpu.trace_start"() <{level = 10 : i32, message = "bqk,bkd->bqd"}> : () -> ()
    %cst_9 = arith.constant dense<0.000000e+00> : vector<2x6x2xf32>
    %34 = tpu.matmul %33, %18, %cst_9 {dimension_numbers = #tpu.dot_dimension_numbers<[2], [1], [1], [2], [0, 0, 0, 1, 1, 2], [0], [0]>} : vector<2x6x6xf32>, vector<2x6x2xf32>, vector<2x6x2xf32> -> vector<2x6x2xf32>
    "tpu.trace_stop"() : () -> ()
    %35 = vector.extract_strided_slice %8 {offsets = [0, 2], sizes = [12, 2], strides = [1, 1]} : vector<12x4xf32> to vector<12x2xf32>
    %36 = vector.shape_cast %35 : vector<12x2xf32> to vector<2x6x2xf32>
    %37 = vector.extract_strided_slice %5 {offsets = [0, 2], sizes = [12, 2], strides = [1, 1]} : vector<12x4xf32> to vector<12x2xf32>
    %38 = vector.shape_cast %37 : vector<12x2xf32> to vector<2x6x2xf32>
    %39 = vector.extract_strided_slice %6 {offsets = [0, 2], sizes = [12, 2], strides = [1, 1]} : vector<12x4xf32> to vector<12x2xf32>
    %40 = vector.shape_cast %39 : vector<12x2xf32> to vector<2x6x2xf32>
    "tpu.trace_start"() <{level = 10 : i32, message = "bqd,bkd->bqk"}> : () -> ()
    %cst_10 = arith.constant dense<0.000000e+00> : vector<2x6x6xf32>
    %41 = tpu.matmul %36, %38, %cst_10 {dimension_numbers = #tpu.dot_dimension_numbers<[2], [2], [1], [1], [0, 0, 0, 1, 1, 1], [0], [0]>} : vector<2x6x2xf32>, vector<2x6x2xf32>, vector<2x6x6xf32> -> vector<2x6x6xf32>
    %cst_11 = arith.constant 0xFF800000 : f32
    "tpu.trace_stop"() : () -> ()
    %42 = vector.shape_cast %12 : vector<1x6x6xi1> to vector<1x6x6xi1>
    %43 = vector.broadcast %42 : vector<1x6x6xi1> to vector<2x6x6xi1>
    %44 = vector.broadcast %cst_11 : f32 to vector<2x6x6xf32>
    %45 = arith.select %43, %44, %41 : vector<2x6x6xi1>, vector<2x6x6xf32>
    %cst_12 = arith.constant dense<0xFF800000> : vector<2x6xf32>
    %46 = vector.multi_reduction <maximumf>, %45, %cst_12 [2] : vector<2x6x6xf32> to vector<2x6xf32>
    %47 = vector.shape_cast %46 : vector<2x6xf32> to vector<2x6x1xf32>
    %48 = vector.broadcast %47 : vector<2x6x1xf32> to vector<2x6x6xf32>
    %49 = arith.subf %45, %48 : vector<2x6x6xf32>
    %50 = math.exp %49 : vector<2x6x6xf32>
    %cst_13 = arith.constant dense<0.000000e+00> : vector<2x6xf32>
    %51 = vector.multi_reduction <add>, %50, %cst_13 [2] : vector<2x6x6xf32> to vector<2x6xf32>
    %52 = vector.shape_cast %51 : vector<2x6xf32> to vector<2x6x1xf32>
    %53 = tpu.reciprocal %52 {approx = true} : vector<2x6x1xf32> -> vector<2x6x1xf32>
    %54 = vector.broadcast %53 : vector<2x6x1xf32> to vector<2x6x6xf32>
    %55 = arith.mulf %50, %54 : vector<2x6x6xf32>
    "tpu.trace_start"() <{level = 10 : i32, message = "bqk,bkd->bqd"}> : () -> ()
    %cst_14 = arith.constant dense<0.000000e+00> : vector<2x6x2xf32>
    %56 = tpu.matmul %55, %40, %cst_14 {dimension_numbers = #tpu.dot_dimension_numbers<[2], [1], [1], [2], [0, 0, 0, 1, 1, 2], [0], [0]>} : vector<2x6x6xf32>, vector<2x6x2xf32>, vector<2x6x2xf32> -> vector<2x6x2xf32>
    "tpu.trace_stop"() : () -> ()
    %57 = tpu.concatenate %34, %56 in 2 : vector<2x6x2xf32>, vector<2x6x2xf32> -> vector<2x6x4xf32>
    %c0_15 = arith.constant 0 : index
    %c0_16 = arith.constant 0 : index
    %c0_17 = arith.constant 0 : index
    %58 = vector.load %arg3[%c0_15, %c0_16, %c0_17] : memref<2x6x4xf32, #tpu.memory_space<vmem>>, vector<2x6x4xf32>
    tpu.vector_store %arg3[%c0_15, %c0_16, %c0_17], %57 {strides = array<i32>} : memref<2x6x4xf32, #tpu.memory_space<vmem>>, vector<2x6x4xf32>,
    return
  }
  func.func @transform_0(%arg0: i32) -> (i32, i32, i32) {
    %c0_i32 = arith.constant 0 : i32
    %c0_i32_0 = arith.constant 0 : i32
    %c0_i32_1 = arith.constant 0 : i32
    return %arg0, %c0_i32, %c0_i32_0 : i32, i32, i32
  }
  func.func @transform_1(%arg0: i32) -> (i32, i32) {
    %c0_i32 = arith.constant 0 : i32
    %c0_i32_0 = arith.constant 0 : i32
    %c0_i32_1 = arith.constant 0 : i32
    return %c0_i32, %c0_i32_0 : i32, i32
  }
  func.func @transform_2(%arg0: i32) -> (i32, i32, i32) {
    %c0_i32 = arith.constant 0 : i32
    %c0_i32_0 = arith.constant 0 : i32
    %c0_i32_1 = arith.constant 0 : i32
    return %arg0, %c0_i32, %c0_i32_0 : i32, i32, i32
  }
}

</mosaic_0001>

<bundles_post_ra>
// kernel: tpu_custom_call.1
= control target key start
LH: loop header
LB: loop body
LE: loop exit
PB: predicated region body
PF: predicated region fallthrough
CT: control target
= control target key end

     0   :  { %vm78_vm0 = vcmask 1042432   ;;  %v19_v0 = vlaneseq  ;;  %v1079_v4 = vmov 1983009808   ;;  %vm73_vm1 = vcmask 23552   ;;  %s1084_s15 = smov 122   ;;  %s1085_s16 = smov 126   ;;  %s1224_s1 = inlined_call_operand.vmem [shape: f32[3,12], index: 1, kind: input, shape index: {}]   ;;  %s1225_s0 = inlined_call_operand.vmem [shape: f32[2,6,3], index: 0, kind: input, shape index: {}]   ;;  %s1226_s2 = inlined_call_operand.vmem [shape: f32[2,6,4], index: 2, kind: output, shape index: {}]  }
   0x1   :  { %v47_v1 = vld [vmem:[%s1224_s1] sm:$0x7]  ;;  %v12_v3 = vld [vmem:[%s1225_s0 + $0x8] sm:$0x3f]  ;;  %v17_v5 = vunpack.c.l.s4 %v1079_v4  ;;  %v1080_v24 = vmov 0.0   ;;  %vm1081_vm2 = vmmov 0  }
   0x2   :  { %v11_v2 = vld [vmem:[%s1225_s0] sm:$0x3f]  ;;  %1007 = vmatprep.subr.msk.mxu0 %vm78_vm0, %v47_v1  ;;  %v1113_v6 = vshrl.u32 %v19_v0, 7  ;;  %v31_v9 = vcombine.high %v12_v3, %v12_v3  ;;  %1012 = vmatprep.subr.mxu1 %v1080_v24  ;;  %s1082_s0 = smov 124   ;;  %vm252_vm3 = vcmask 15360   ;;  %v1162_v61 = vand.u32 127, %v19_v0 }
   0x3   :  { %1008 = vmatpush3.msk.msra.mxu0 %vm78_vm0, %v47_v1  ;;  %v15_v7 = vcombine.high %v11_v2, %v11_v2  ;;  %v18_v8 = vunpack.c.0.s8 %v17_v5  ;;  %1014 = vmatprep.mubr.msk.f32.mxu1 %vm1081_vm2, %v1080_v24  ;;  %vm439_vm5 = vcmask 46080   ;;  %s1083_s1 = smov 120   ;;  %vm468_vm6 = vcmask 1045504   ;;  %s1086_s17 = smov 118  }
   0x4   :  { %1017 = vmatprep.subr.mxu0 %v1080_v24  ;;  %vm163_vm4 = vcmp.gt.s32.totalorder %v1162_v61, %v1113_v6  ;;  %vm464_vm7 = vcmask 48128   ;;  %s1087_s18 = smov 2   ;;  %vm962_vm8 = vcmask 29696  }
   0x5   :  { %v1116_v10 = vsub.s32 %v18_v8, %v1113_v6 }
   0x7   :  { %v22_v11 = vrot.slane %v11_v2, %v1116_v10  ;;  %v29_v12 = vrot.slane %v15_v7, %v1116_v10  ;;  %v38_v13 = vrot.slane %v12_v3, %v1116_v10  ;;  %v45_v14 = vrot.slane %v31_v9, %v1116_v10 }
   0x9   :  { %v30_v15 = vcombine.high %v22_v11, %v22_v11  ;;  %v46_v16 = vcombine.high %v38_v13, %v38_v13  ;;  %v49_v17 = vcombine.low %v29_v12, %v38_v13 }
   0xb   :  { %v48_v18 = vcombine.low %v22_v11, %v30_v15  ;;  %v63_v19 = vrot.slane %v49_v17, %v1116_v10  ;;  %v65_v20 = vcombine.low %v46_v16, %v45_v14 }
   0xd   :  { %v56_v21 = vrot.slane %v48_v18, %v1116_v10  ;;  %v72_v22 = vrot.slane %v65_v20, %v1116_v10 }
   0xf   :  { %v64_v23 = vcombine.low %v56_v21, %v63_v19 }
  0x11   :  { %1009 = vmatprep.mubr.msk.f32.mxu0 %vm73_vm1, %v64_v23 }
  0x12   :  { %1010 = vmatmul.mubr.msk.f32.vlgmr.msra.gmra.mxu0 %vm73_vm1, %v72_v22 }
  0x13   :  { %1019 = vmatprep.mubr.msk.f32.mxu0 %vm1081_vm2, %v1080_v24 }
  0xd2   :  { %v1011_v25 = vpop.f32.mrf.mxu0 }
  0xd3   :  { %v216_v29 = vrot.slane %v1011_v25, %v1116_v10  ;;  %v158_v47 = vmul.f32 0.9659363, %v1011_v25 }
  0xd4   :  { %v148_v26 = vpop.f32.mrf.mxu0 }
  0xd5   :  { %v193_v27 = vcombine.high %v148_v26, %v148_v26  ;;  %v200_v28 = vrot.slane %v148_v26, %v1116_v10  ;;  %v217_v34 = vcombine.high %v216_v29, %v216_v29  ;;  %v157_v42 = vmul.f32 0.9659363, %v148_v26 }
  0xd6   :  { %v189_v50 = vrot.slane %v158_v47, %v1116_v10 }
  0xd7   :  { %v207_v30 = vrot.slane %v193_v27, %v1116_v10  ;;  %v208_v31 = vcombine.high %v200_v28, %v200_v28  ;;  %v357_v40 = vrot.slane %v217_v34, %v1116_v10  ;;  %v166_v43 = vcombine.high %v157_v42, %v157_v42 }
  0xd8   :  { %v173_v44 = vrot.slane %v157_v42, %v1116_v10  ;;  %v190_v53 = vcombine.high %v189_v50, %v189_v50 }
  0xd9   :  { %v209_v32 = vcombine.high %v207_v30, %v207_v30  ;;  %v234_v33 = vcombine.low %v200_v28, %v208_v31  ;;  %v248_v36 = vrot.slane %v207_v30, %v1116_v10  ;;  %v180_v45 = vrot.slane %v166_v43, %v1116_v10 }
  0xda   :  { %v181_v46 = vcombine.high %v173_v44, %v173_v44  ;;  %v341_v58 = vrot.slane %v190_v53, %v1116_v10 }
  0xdb   :  { %v241_v35 = vrot.slane %v234_v33, %v1116_v10  ;;  %v343_v37 = vcombine.low %v209_v32, %v216_v29  ;;  %v182_v48 = vcombine.high %v180_v45, %v180_v45  ;;  %v232_v55 = vrot.slane %v180_v45, %v1116_v10 }
  0xdc   :  { %v218_v49 = vcombine.low %v173_v44, %v181_v46 }
  0xdd   :  { %v1136_v38 = vcombine.low %v241_v35, %v248_v36  ;;  %v350_v39 = vrot.slane %v343_v37, %v1116_v10  ;;  %v327_v51 = vcombine.low %v182_v48, %v189_v50 }
  0xde   :  { %v225_v52 = vrot.slane %v218_v49, %v1116_v10 }
  0xdf   :  { %250 = vrot.lane.b32.xlu0 %v1136_v38, %s1082_s0  ;;  %v1141_v41 = vcombine.low %v350_v39, %v357_v40  ;;  %v334_v56 = vrot.slane %v327_v51, %v1116_v10 }
  0xe0   :  { %v233_v57 = vcombine.low %v225_v52, %v232_v55 }
  0xe1   :  { %v342_v60 = vcombine.low %v334_v56, %v341_v58 }
  0xe3   :  { %359 = vrot.lane.b32.xlu0 %v1141_v41, %s1082_s0 }
 0x151   :  { %v251_v54 = vpop.permute.xlu0 %250 }
 0x152   :  { %1013 = vmatpush3.xpose.msk.msra.mxu1 %vm252_vm3, %v251_v54 }
 0x153   :  { %1022 = vmatprep.subr.mxu1 %v1080_v24 }
 0x155   :  { %v360_v59 = vpop.permute.xlu0 %359  ;;  %1015 = vmatmul.mubr.msk.f32.vlgmr.msra.gmra.mxu1 %vm252_vm3, %v233_v57 }
 0x156   :  { %1018 = vmatpush3.xpose.msk.msra.mxu0 %vm252_vm3, %v360_v59  ;;  %1024 = vmatprep.mubr.msk.f32.mxu1 %vm1081_vm2, %v1080_v24 }
 0x157   :  { %1027 = vmatprep.subr.mxu0 %v1080_v24 }
 0x159   :  { %1020 = vmatmul.mubr.msk.f32.vlgmr.msra.gmra.mxu0 %vm252_vm3, %v342_v60 }
 0x15a   :  { %1029 = vmatprep.mubr.msk.f32.mxu0 %vm1081_vm2, %v1080_v24 }
 0x215   :  { %v323_v62 = vpop.f32.mrf.mxu1 }
 0x216   :  { %v437_v63 = vsel %vm163_vm4, -inf, %v323_v62 }
 0x217   :  { %v1016_v1 = vpop.f32.mrf.mxu1  ;;  %v440_v2 = vsel %vm439_vm5, %v437_v63, -inf }
 0x218   :  { %441 = vmax.xlane.f32.xlu1 %v440_v2 }
 0x219   :  { %v431_v3 = vpop.f32.mrf.mxu0 }
 0x21a   :  { %v438_v4 = vsel %vm163_vm4, -inf, %v431_v3 }
 0x21b   :  { %v1021_v0 = vpop.f32.mrf.mxu0  ;;  %v443_v5 = vsel %vm439_vm5, %v438_v4, -inf }
 0x21c   :  { %444 = vmax.xlane.f32.xlu1 %v443_v5 }
 0x22d   :  { %462 = vrot.lane.b32.xlu1 %v1136_v38, %s1083_s1 }
 0x231   :  { %541 = vrot.lane.b32.xlu1 %v1141_v41, %s1083_s1 }
 0x235   :  { %620 = vrot.lane.b32.xlu1 %v1136_v38, %s1084_s15 }
 0x239   :  { %698 = vrot.lane.b32.xlu1 %v1141_v41, %s1084_s15 }
 0x2a1   :  { %v442_v7 = vpop.xlane.xlu1 %441 }
 0x2a2   :  { %v446_v8 = vsub.f32 %v437_v63, %v442_v7 }
 0x2a4   :  { %v448_v9 = vmul.f32 1.442695, %v446_v8 }
 0x2a5   :  { %v445_v10 = vpop.xlane.xlu1 %444 }
 0x2a6   :  { %1063 = vpow2.f32 %v448_v9  ;;  %v447_v11 = vsub.f32 %v438_v4, %v445_v10 }
 0x2a8   :  { %v450_v12 = vmul.f32 1.442695, %v447_v11 }
 0x2a9   :  { %v463_v13 = vpop.permute.xlu1 %462 }
 0x2aa   :  { %1065 = vpow2.f32 %v450_v12  ;;  %1023 = vmatpush3.msk.msra.mxu1 %vm468_vm6, %v463_v13 }
 0x2ab   :  { %1032 = vmatprep.subr.mxu1 %v1080_v24 }
 0x2ad   :  { %v542_v14 = vpop.permute.xlu1 %541 }
 0x2ae   :  { %1028 = vmatpush3.msk.msra.mxu0 %vm468_vm6, %v542_v14 }
 0x2af   :  { %1037 = vmatprep.subr.mxu0 %v1080_v24 }
 0x2b1   :  { %v621_v19 = vpop.permute.xlu1 %620 }
 0x2b3   :  { %v1064_v15 = vpop.eup %1063 }
 0x2b4   :  { %v452_v16 = vsel %vm439_vm5, %v1064_v15, 0.0 }
 0x2b5   :  { %453 = vadd.xlane.f32.xlu0 %v452_v16  ;;  %v699_v20 = vpop.permute.xlu1 %698 }
 0x2b7   :  { %v1066_v17 = vpop.eup %1065 }
 0x2b8   :  { %v455_v18 = vsel %vm439_vm5, %v1066_v17, 0.0 }
 0x2b9   :  { %456 = vadd.xlane.f32.xlu1 %v455_v18 }
 0x2ca   :  { %696 = vrot.lane.b32.xlu1 %v342_v60, %s1085_s16 }
 0x2cb   :  { %618 = vrot.lane.b32.xlu0 %v233_v57, %s1085_s16 }
 0x33e   :  { %v454_v21 = vpop.xlane.xlu0 %453 }
 0x33f   :  { %1067 = vrcp.f32 %v454_v21 }
 0x342   :  { %v457_v22 = vpop.xlane.xlu1 %456  ;;  %v619_v28 = vpop.permute.xlu0 %618 }
 0x343   :  { %1069 = vrcp.f32 %v457_v22 }
 0x346   :  { %v697_v29 = vpop.permute.xlu1 %696 }
 0x34c   :  { %v1068_v23 = vpop.eup %1067 }
 0x34d   :  { %v460_v25 = vmul.f32 %v1068_v23, %v1064_v15 }
 0x34f   :  { %1025 = vmatmul.mubr.msk.f32.vlgmr.msra.gmra.mxu1 %vm464_vm7, %v460_v25 }
 0x350   :  { %v1070_v26 = vpop.eup %1069  ;;  %1033 = vmatpush3.xpose.msk.msra.mxu1 %vm252_vm3, %v621_v19  ;;  %1034 = vmatprep.mubr.msk.f32.mxu1 %vm1081_vm2, %v1080_v24 }
 0x351   :  { %v461_v27 = vmul.f32 %v1070_v26, %v1066_v17  ;;  %1042 = vmatprep.subr.mxu1 %v1080_v24 }
 0x353   :  { %1030 = vmatmul.mubr.msk.f32.vlgmr.msra.gmra.mxu0 %vm464_vm7, %v461_v27  ;;  %1035 = vmatmul.mubr.msk.f32.vlgmr.msra.gmra.mxu1 %vm252_vm3, %v619_v28 }
 0x354   :  { %1038 = vmatpush3.xpose.msk.msra.mxu0 %vm252_vm3, %v699_v20  ;;  %1039 = vmatprep.mubr.msk.f32.mxu0 %vm1081_vm2, %v1080_v24 }
 0x355   :  { %1047 = vmatprep.subr.mxu0 %v1080_v24  ;;  %1044 = vmatprep.mubr.msk.f32.mxu1 %vm1081_vm2, %v1080_v24 }
 0x357   :  { %1040 = vmatmul.mubr.msk.f32.vlgmr.msra.gmra.mxu0 %vm252_vm3, %v697_v29 }
 0x358   :  { %1049 = vmatprep.mubr.msk.f32.mxu0 %vm1081_vm2, %v1080_v24 }
 0x40f   :  { %v537_v30 = vpop.f32.mrf.mxu1 }
 0x411   :  { %v1026_v31 = vpop.f32.mrf.mxu1 }
 0x413   :  { %v614_v32 = vpop.f32.mrf.mxu0  ;;  %v692_v33 = vpop.f32.mrf.mxu1 }
 0x414   :  { %v774_v34 = vsel %vm163_vm4, -inf, %v692_v33 }
 0x415   :  { %v1031_v35 = vpop.f32.mrf.mxu0  ;;  %v1036_v36 = vpop.f32.mrf.mxu1  ;;  %v776_v37 = vsel %vm439_vm5, %v774_v34, -inf }
 0x416   :  { %777 = vmax.xlane.f32.xlu1 %v776_v37 }
 0x417   :  { %v770_v39 = vpop.f32.mrf.mxu0 }
 0x418   :  { %v775_v40 = vsel %vm163_vm4, -inf, %v770_v39 }
 0x419   :  { %v1041_v42 = vpop.f32.mrf.mxu0  ;;  %v779_v24 = vsel %vm439_vm5, %v775_v40, -inf }
 0x41a   :  { %780 = vmax.xlane.f32.xlu0 %v779_v24 }
 0x430   :  { %875 = vrot.lane.b32.xlu0 %v1141_v41, %s1086_s17 }
 0x49f   :  { %v778_v43 = vpop.xlane.xlu1 %777 }
 0x4a0   :  { %v782_v44 = vsub.f32 %v774_v34, %v778_v43 }
 0x4a2   :  { %v784_v45 = vmul.f32 1.442695, %v782_v44 }
 0x4a3   :  { %v781_v46 = vpop.xlane.xlu0 %780 }
 0x4a4   :  { %1071 = vpow2.f32 %v784_v45  ;;  %v783_v47 = vsub.f32 %v775_v40, %v781_v46 }
 0x4a6   :  { %v786_v48 = vmul.f32 1.442695, %v783_v47 }
 0x4a7   :  { %v876_v49 = vpop.permute.xlu0 %875 }
 0x4a8   :  { %1073 = vpow2.f32 %v786_v48  ;;  %1048 = vmatpush3.msk.msra.mxu0 %vm468_vm6, %v876_v49 }
 0x4b1   :  { %v1072_v6 = vpop.eup %1071 }
 0x4b2   :  { %v788_v50 = vsel %vm439_vm5, %v1072_v6, 0.0 }
 0x4b3   :  { %789 = vadd.xlane.f32.xlu1 %v788_v50 }
 0x4b5   :  { %v1074_v51 = vpop.eup %1073 }
 0x4b6   :  { %v791_v52 = vsel %vm439_vm5, %v1074_v51, 0.0 }
 0x4b7   :  { %792 = vadd.xlane.f32.xlu1 %v791_v52 }
 0x4c8   :  { %798 = vrot.lane.b32.xlu1 %v1136_v38, %s1086_s17 }
 0x53c   :  { %v790_v41 = vpop.xlane.xlu1 %789 }
 0x53d   :  { %1075 = vrcp.f32 %v790_v41 }
 0x540   :  { %v793_v53 = vpop.xlane.xlu1 %792 }
 0x541   :  { %1077 = vrcp.f32 %v793_v53 }
 0x544   :  { %v799_v54 = vpop.permute.xlu1 %798 }
 0x545   :  { %1043 = vmatpush3.msk.msra.mxu1 %vm468_vm6, %v799_v54 }
 0x54a   :  { %v1076_v55 = vpop.eup %1075 }
 0x54b   :  { %v796_v56 = vmul.f32 %v1076_v55, %v1072_v6 }
 0x54d   :  { %1045 = vmatmul.mubr.msk.f32.vlgmr.msra.gmra.mxu1 %vm464_vm7, %v796_v56 }
 0x54e   :  { %v1078_v57 = vpop.eup %1077 }
 0x54f   :  { %v797_v58 = vmul.f32 %v1078_v57, %v1074_v51 }
 0x551   :  { %1050 = vmatmul.mubr.msk.f32.vlgmr.msra.gmra.mxu0 %vm464_vm7, %v797_v58 }
 0x60d   :  { %v871_v59 = vpop.f32.mrf.mxu1 }
 0x60e   :  { %954 = vrot.lane.b32.xlu1 %v871_v59, %s1087_s18 }
 0x60f   :  { %v1046_v60 = vpop.f32.mrf.mxu1 }
 0x611   :  { %v948_v38 = vpop.f32.mrf.mxu0 }
 0x612   :  { %956 = vrot.lane.b32.xlu1 %v948_v38, %s1087_s18 }
 0x613   :  { %v1051_v61 = vpop.f32.mrf.mxu0 }
 0x680   :  { %v955_v62 = vpop.permute.xlu1 %954 }
 0x681   :  { %v960_v63 = vsel %vm252_vm3, %v537_v30, %v955_v62 }
 0x682   :  { %963 = vst.msk [vmem:[%s1226_s2] sm:$0x3f] %vm962_vm8, %v960_v63 }
 0x684   :  { %v957_v1 = vpop.permute.xlu1 %956 }
 0x685   :  { %v961_v2 = vsel %vm252_vm3, %v614_v32, %v957_v1 }
 0x686   :  { %964 = vst.msk [vmem:[%s1226_s2 + $0x8] sm:$0x3f] %vm962_vm8, %v961_v2 }

</bundles_post_ra>
